<compile_context>
chip_gen: v6e
topology: v6e:2x2x1
jax: 0.10.0
libtpu: 0.0.40
codegen_flags: <defaults>
</compile_context>

<pallas_src>
import jax
import jax.numpy as jnp
from jax.experimental import pallas as pl
from jax.experimental.pallas import tpu as pltpu


def _round_up(x, m):
    return ((x + m - 1) // m) * m


def _vmem_budget_bytes():
    # ~80% of physical VMEM leaves headroom for Mosaic internal scratch:
    # ~51 MiB on v7x (64 MiB/TC), ~102 MiB on v5e/v6e (128 MiB parts).
    try:
        cap = pltpu.get_tpu_info().vmem_capacity_bytes
    except Exception:
        cap = 64 * 1024 * 1024
    return max(32 * 1024 * 1024, int(0.8 * cap))


def _pick_tile_m(M, K, tile_n, vmem_limit):
    """Largest M tile (multiple of 16, preferring 256-aligned sizes) whose
    double-buffered working set fits comfortably in the scoped VMEM budget."""
    budget = vmem_limit // 2
    tile = 16
    for cand in (1024, 768, 512, 384, 256, 128, 64, 32, 16):
        need = (2 * cand * K * 2          # double-buffered bf16 patch tiles
                + 2 * cand * tile_n * 4   # double-buffered f32 output tiles
                + 2 * K * tile_n * 2      # double-buffered bf16 weight tiles
                + 2 * 1024 * 1024)        # scale/shift blocks + headroom
        if need <= budget:
            tile = cand
            break
    return min(tile, _round_up(M, 16))


# -----------------------------------------------------------------------------
# Stats pre-pass (preferred): per-column sum and K x K Gram of the patch matrix.
# csum = colsum(P) @ W ; ssq_c = w_c^T (P^T P) w_c  -> no M x C intermediate.
# -----------------------------------------------------------------------------
def _stats_gram_kernel(p_ref, colsum_ref, gram_ref):
    @pl.when(pl.program_id(0) == 0)
    def _init():
        colsum_ref[...] = jnp.zeros_like(colsum_ref)
        gram_ref[...] = jnp.zeros_like(gram_ref)

    p = p_ref[...]                                              # (tile_m, K) bf16
    colsum_ref[...] += jnp.sum(p.astype(jnp.float32), axis=0, keepdims=True)
    # P^T P on the MXU with f32 accumulation; zero-padded rows contribute nothing.
    gram_ref[...] += jax.lax.dot_general(
        p, p, dimension_numbers=(((0,), (0,)), ((), ())),
        preferred_element_type=jnp.float32)


# -----------------------------------------------------------------------------
# Stats fallback for very large K: accumulate per-channel sum / sum-of-squares of
# the conv output tile-by-tile WITHOUT writing the conv intermediate to HBM.
# -----------------------------------------------------------------------------
def _stats_gemm_kernel(p_ref, w_ref, sum_ref, ssq_ref):
    @pl.when(pl.program_id(0) == 0)
    def _init():
        sum_ref[...] = jnp.zeros_like(sum_ref)
        ssq_ref[...] = jnp.zeros_like(ssq_ref)

    acc = jnp.dot(p_ref[...], w_ref[...], preferred_element_type=jnp.float32)
    sum_ref[...] += jnp.sum(acc, axis=0, keepdims=True)
    ssq_ref[...] += jnp.sum(acc * acc, axis=0, keepdims=True)


# -----------------------------------------------------------------------------
# Main pass: GEMM (bf16 -> f32 MXU) + fused per-channel affine epilogue.
# out = (P @ W) * scale + shift  -> single HBM write of the final output.
# -----------------------------------------------------------------------------
def _conv_bn_kernel(p_ref, w_ref, scale_ref, shift_ref, o_ref):
    acc = jnp.dot(p_ref[...], w_ref[...], preferred_element_type=jnp.float32)
    o_ref[...] = (acc * scale_ref[...] + shift_ref[...]).astype(o_ref.dtype)


# -----------------------------------------------------------------------------
# im2col via one fused XLA gather on bf16 input; feature dim ordered (Cin, kh, kw)
# to match weight.reshape(Cout, Cin*k*k).  NHWC output -> (M, K) reshape is free.
# -----------------------------------------------------------------------------
def _extract_patches(x_bf16, k, stride, padding, dilation):
    patches = jax.lax.conv_general_dilated_patches(
        x_bf16,
        filter_shape=(k, k),
        window_strides=(stride, stride),
        padding=[(padding, padding), (padding, padding)],
        rhs_dilation=(dilation, dilation),
        dimension_numbers=("NCHW", "OIHW", "NHWC"),
    )  # (N, OH, OW, Cin*k*k)
    N, OH, OW, K = patches.shape
    return patches.reshape(N * OH * OW, K), OH, OW


# -----------------------------------------------------------------------------
# Wrapper matching conv2DBatchNorm.forward semantics
# -----------------------------------------------------------------------------
def conv2d_batchnorm(x, weight, gamma=None, beta=None, bias=None, *,
                     stride=1, padding=1, dilation=1, with_bn=True, eps=1e-5,
                     tile_m=None, max_gram_k=1024):
    N, Cin, H, W = x.shape
    Cout, Cin_w, kH, kW = weight.shape
    assert Cin_w == Cin and kH == kW, "square kernels only in this synthetic port"
    if with_bn:
        # PyTorch module constructs the conv with bias = (not with_bn).
        assert bias is None, "conv bias is unused when with_bn=True"
    k = kH

    # bf16 BEFORE im2col: the inflated patch stream is emitted once, already bf16.
    patches, OH, OW = _extract_patches(x.astype(jnp.bfloat16), k, stride, padding, dilation)
    M, K = patches.shape

    # Channel tiling: no padding for small Cout; lane-dense 128/256-wide tiles otherwise.
    if Cout <= 128:
        tile_n, C_pad = Cout, Cout
    else:
        tile_n = 256 if Cout >= 256 else 128
        C_pad = _round_up(Cout, tile_n)
    n_ctiles = C_pad // tile_n

    vmem_limit = _vmem_budget_bytes()
    if tile_m is None:
        tile_m = _pick_tile_m(M, K, tile_n, vmem_limit)
    tile_m = _round_up(max(16, min(int(tile_m), M)), 16)   # bf16 sublane packing
    M_pad = _round_up(M, tile_m)
    n_mtiles = M_pad // tile_m

    # Row padding only when tile_m does not divide M; zero rows are inert for the
    # statistics and the GEMM alike.
    if M_pad != M:
        patches = jnp.pad(patches, ((0, M_pad - M), (0, 0)))

    # (K, C_pad) bf16 weights; zero-padded channels yield zero outputs (sliced away).
    w2d = weight.reshape(Cout, K).T.astype(jnp.bfloat16)
    if C_pad != Cout:
        w2d = jnp.pad(w2d, ((0, 0), (0, C_pad - Cout)))

    count = jnp.float32(M)

    if with_bn:
        if K <= max_gram_k:
            colsum, gram = pl.pallas_call(
                _stats_gram_kernel,
                out_shape=(jax.ShapeDtypeStruct((1, K), jnp.float32),
                           jax.ShapeDtypeStruct((K, K), jnp.float32)),
                grid_spec=pltpu.PrefetchScalarGridSpec(
                    num_scalar_prefetch=0,
                    grid=(n_mtiles,),
                    in_specs=[pl.BlockSpec((tile_m, K), lambda i: (i, 0))],
                    out_specs=[pl.BlockSpec((1, K), lambda i: (0, 0)),      # resident
                               pl.BlockSpec((K, K), lambda i: (0, 0))],     # accumulators
                ),
                compiler_params=pltpu.CompilerParams(
                    dimension_semantics=("arbitrary",),   # stats accumulate across M tiles
                    vmem_limit_bytes=vmem_limit),
                cost_estimate=pl.CostEstimate(
                    flops=2 * M_pad * K * K,
                    transcendentals=0,
                    bytes_accessed=M_pad * K * 2 + K * K * 4 + K * 4),
            )(patches)
            w_f32 = w2d.astype(jnp.float32)
            csum = colsum @ w_f32                                        # (1, C_pad)
            cssq = jnp.sum((gram @ w_f32) * w_f32, axis=0, keepdims=True)
        else:
            csum, cssq = pl.pallas_call(
                _stats_gemm_kernel,
                out_shape=(jax.ShapeDtypeStruct((1, C_pad), jnp.float32),
                           jax.ShapeDtypeStruct((1, C_pad), jnp.float32)),
                grid_spec=pltpu.PrefetchScalarGridSpec(
                    num_scalar_prefetch=0,
                    grid=(n_mtiles,),
                    in_specs=[pl.BlockSpec((tile_m, K), lambda i: (i, 0)),
                              pl.BlockSpec((K, C_pad), lambda i: (0, 0))],
                    out_specs=[pl.BlockSpec((1, C_pad), lambda i: (0, 0)),
                               pl.BlockSpec((1, C_pad), lambda i: (0, 0))],
                ),
                compiler_params=pltpu.CompilerParams(
                    dimension_semantics=("arbitrary",),
                    vmem_limit_bytes=vmem_limit),
                cost_estimate=pl.CostEstimate(
                    flops=2 * M_pad * K * C_pad,
                    transcendentals=0,
                    bytes_accessed=M_pad * K * 2 + K * C_pad * 2 + 2 * C_pad * 4),
            )(patches, w2d)

        # Tiny (1, C_pad) glue: fold batch stats + affine params into scale/shift so the
        # GEMM epilogue is a single FMA per element.  Divide by the REAL M (padded rows
        # contributed zero) -> exact BatchNorm2d training-mode semantics.
        # NOTE: var via E[x^2]-E[x]^2 in f32 is a known tolerance limit for huge M /
        # large-mean activations.
        mean = csum / count
        var = jnp.maximum(cssq / count - jnp.square(mean), 0.0)   # biased, as BatchNorm2d
        g = gamma.astype(jnp.float32)
        b = beta.astype(jnp.float32)
        if C_pad != Cout:
            g = jnp.pad(g, (0, C_pad - Cout))
            b = jnp.pad(b, (0, C_pad - Cout))
        scale = g.reshape(1, C_pad) * jax.lax.rsqrt(var + jnp.float32(eps))
        shift = b.reshape(1, C_pad) - mean * scale
    else:
        scale = jnp.ones((1, C_pad), jnp.float32)
        if bias is not None:
            sb = bias.astype(jnp.float32)
            if C_pad != Cout:
                sb = jnp.pad(sb, (0, C_pad - Cout))
            shift = sb.reshape(1, C_pad)
        else:
            shift = jnp.zeros((1, C_pad), jnp.float32)

    # Main pass: no cross-tile state -> both grid axes "parallel" (dual-TC sharding).
    out_flat = pl.pallas_call(
        _conv_bn_kernel,
        out_shape=jax.ShapeDtypeStruct((M_pad, C_pad), jnp.float32),
        grid_spec=pltpu.PrefetchScalarGridSpec(
            num_scalar_prefetch=0,
            grid=(n_mtiles, n_ctiles),
            in_specs=[
                pl.BlockSpec((tile_m, K), lambda i, j: (i, 0)),     # patch tiles stream
                pl.BlockSpec((K, tile_n), lambda i, j: (0, j)),     # weight column tiles
                pl.BlockSpec((1, tile_n), lambda i, j: (0, j)),     # per-channel scale
                pl.BlockSpec((1, tile_n), lambda i, j: (0, j)),     # per-channel shift
            ],
            out_specs=pl.BlockSpec((tile_m, tile_n), lambda i, j: (i, j)),
        ),
        compiler_params=pltpu.CompilerParams(
            dimension_semantics=("parallel", "parallel"),
            vmem_limit_bytes=vmem_limit),
        cost_estimate=pl.CostEstimate(
            flops=2 * M_pad * K * C_pad + 2 * M_pad * C_pad,
            transcendentals=0,
            bytes_accessed=M_pad * K * 2 + n_mtiles * K * C_pad * 2
                           + M_pad * C_pad * 4 + 4 * C_pad * 4),
    )(patches, w2d, scale, shift)

    # [:M,:Cout] slice + NHWC->NCHW transpose stays in XLA (fuses into one pass).
    out = out_flat[:M, :Cout].reshape(N, OH, OW, Cout).transpose(0, 3, 1, 2)
    return out


# -----------------------------------------------------------------------------
# Pure-JAX reference (sanity check)
# -----------------------------------------------------------------------------
def _reference(x, weight, gamma, beta, *, stride, padding, dilation, eps):
    conv = jax.lax.conv_general_dilated(
        x, weight, window_strides=(stride, stride),
        padding=[(padding, padding), (padding, padding)],
        rhs_dilation=(dilation, dilation),
        dimension_numbers=("NCHW", "OIHW", "NCHW"))
    mean = jnp.mean(conv, axis=(0, 2, 3), keepdims=True)
    var = jnp.mean(jnp.square(conv - mean), axis=(0, 2, 3), keepdims=True)
    return (conv - mean) * jax.lax.rsqrt(var + eps) * gamma[None, :, None, None] \
        + beta[None, :, None, None]


if __name__ == "__main__":
    key = jax.random.PRNGKey(0)
    kx, kw = jax.random.split(key)

    # conv2DBatchNorm(in_channels=4, n_filters=8, k_size=3, stride=1, padding=1, with_bn=True)
    N, Cin, H, W = 2, 4, 16, 16
    Cout, ksize, stride, padding, dilation = 8, 3, 1, 1, 1

    x = jax.random.normal(kx, (N, Cin, H, W), dtype=jnp.float32)
    weight = jax.random.normal(kw, (Cout, Cin, ksize, ksize), dtype=jnp.float32) * 0.1
    gamma = jnp.ones((Cout,), dtype=jnp.float32)   # BatchNorm2d default init
    beta = jnp.zeros((Cout,), dtype=jnp.float32)   # BatchNorm2d default init

    # tile_m=128 -> 4-step M grid: exercises the cross-tile patch-side statistics.
    out = conv2d_batchnorm(x, weight, gamma, beta,
                           stride=stride, padding=padding, dilation=dilation,
                           with_bn=True, eps=1e-5, tile_m=128)
    out = jax.block_until_ready(out)
    assert out.shape == (N, Cout, H, W)

    # Tight check vs a reference run on the same bf16-quantized operands (kernel uses
    # bf16 MXU inputs with f32 accumulation).
    ref_q = _reference(x.astype(jnp.bfloat16).astype(jnp.float32),
                       weight.astype(jnp.bfloat16).astype(jnp.float32),
                       gamma, beta, stride=stride, padding=padding,
                       dilation=dilation, eps=1e-5)
    assert jnp.max(jnp.abs(out - ref_q)) < 3e-3, "mismatch vs bf16-matched reference"

    # Loose check vs the full-f32 reference (difference = bf16 operand quantization).
    ref = _reference(x, weight, gamma, beta, stride=stride, padding=padding,
                     dilation=dilation, eps=1e-5)
    assert jnp.max(jnp.abs(out - ref)) < 5e-2, "mismatch vs f32 reference"

    # Auto-sized tile_m (single-tile path here).
    out2 = jax.block_until_ready(
        conv2d_batchnorm(x, weight, gamma, beta, stride=stride, padding=padding,
                         dilation=dilation, with_bn=True, eps=1e-5))
    assert jnp.max(jnp.abs(out2 - ref_q)) < 3e-3

    # Force the large-K fallback statistics kernel (direct per-tile GEMM stats).
    out3 = jax.block_until_ready(
        conv2d_batchnorm(x, weight, gamma, beta, stride=stride, padding=padding,
                         dilation=dilation, with_bn=True, eps=1e-5,
                         tile_m=128, max_gram_k=0))
    assert jnp.max(jnp.abs(out3 - ref_q)) < 3e-3

    print("KERNEL_OK")
</pallas_src>

<mosaic_0001>
module attributes {stable_mosaic.version = 11 : i64} {
  func.func @_stats_gram_kernel(%arg0: i32, %arg1: memref<128x36xbf16, #tpu.memory_space<vmem>>, %arg2: memref<1x36xf32, #tpu.memory_space<vmem>>, %arg3: memref<36x36xf32, #tpu.memory_space<vmem>>) attributes {dimension_semantics = [#tpu.dimension_semantics<arbitrary>], iteration_bounds = array<i64: 4>, scalar_prefetch = 0 : i64, scratch_operands = 0 : i64, tpu.core_type = #tpu.core_type<tc>, window_params = [{transform_indices = @transform_0, window_bounds = array<i64: 128, 36>}, {pipeline_mode = #tpu.pipeline_mode<synchronous>, transform_indices = @transform_1, window_bounds = array<i64: 1, 36>}, {pipeline_mode = #tpu.pipeline_mode<synchronous>, transform_indices = @transform_2, window_bounds = array<i64: 36, 36>}]} {
    %c0_i32 = arith.constant 0 : i32
    %0 = arith.cmpi eq, %arg0, %c0_i32 : i32
    %1 = arith.extui %0 : i1 to i32
    %c0_i32_0 = arith.constant 0 : i32
    %2 = arith.cmpi ne, %1, %c0_i32_0 : i32
    scf.if %2 {
      %cst_11 = arith.constant 0.000000e+00 : f32
      %14 = vector.broadcast %cst_11 : f32 to vector<1x36xf32>
      %c0_12 = arith.constant 0 : index
      %c0_13 = arith.constant 0 : index
      %15 = vector.load %arg2[%c0_12, %c0_13] : memref<1x36xf32, #tpu.memory_space<vmem>>, vector<1x36xf32>
      tpu.vector_store %arg2[%c0_12, %c0_13], %14 {strides = array<i32>} : memref<1x36xf32, #tpu.memory_space<vmem>>, vector<1x36xf32>,
      %cst_14 = arith.constant 0.000000e+00 : f32
      %16 = vector.broadcast %cst_14 : f32 to vector<36x36xf32>
      %c0_15 = arith.constant 0 : index
      %c0_16 = arith.constant 0 : index
      %17 = vector.load %arg3[%c0_15, %c0_16] : memref<36x36xf32, #tpu.memory_space<vmem>>, vector<36x36xf32>
      tpu.vector_store %arg3[%c0_15, %c0_16], %16 {strides = array<i32>} : memref<36x36xf32, #tpu.memory_space<vmem>>, vector<36x36xf32>,
    } else {
    }
    %c0 = arith.constant 0 : index
    %c0_1 = arith.constant 0 : index
    %3 = vector.load %arg1[%c0, %c0_1] : memref<128x36xbf16, #tpu.memory_space<vmem>>, vector<128x36xbf16>
    %c0_2 = arith.constant 0 : index
    %c0_3 = arith.constant 0 : index
    %4 = vector.load %arg2[%c0_2, %c0_3] : memref<1x36xf32, #tpu.memory_space<vmem>>, vector<1x36xf32>
    %5 = arith.extf %3 : vector<128x36xbf16> to vector<128x36xf32>
    %cst = arith.constant dense<0.000000e+00> : vector<36xf32>
    %6 = vector.multi_reduction <add>, %5, %cst [0] : vector<128x36xf32> to vector<36xf32>
    %7 = vector.shape_cast %6 : vector<36xf32> to vector<1x36xf32>
    %8 = arith.addf %4, %7 : vector<1x36xf32>
    %c0_4 = arith.constant 0 : index
    %c0_5 = arith.constant 0 : index
    %9 = vector.load %arg2[%c0_4, %c0_5] : memref<1x36xf32, #tpu.memory_space<vmem>>, vector<1x36xf32>
    tpu.vector_store %arg2[%c0_4, %c0_5], %8 {strides = array<i32>} : memref<1x36xf32, #tpu.memory_space<vmem>>, vector<1x36xf32>,
    %c0_6 = arith.constant 0 : index
    %c0_7 = arith.constant 0 : index
    %10 = vector.load %arg3[%c0_6, %c0_7] : memref<36x36xf32, #tpu.memory_space<vmem>>, vector<36x36xf32>
    %cst_8 = arith.constant dense<0.000000e+00> : vector<36x36xf32>
    %11 = tpu.matmul %3, %3, %cst_8 {dimension_numbers = #tpu.dot_dimension_numbers<[0], [0], [1], [1], [0, 1, 1, 1], [], []>} : vector<128x36xbf16>, vector<128x36xbf16>, vector<36x36xf32> -> vector<36x36xf32>
    %12 = arith.addf %10, %11 : vector<36x36xf32>
    %c0_9 = arith.constant 0 : index
    %c0_10 = arith.constant 0 : index
    %13 = vector.load %arg3[%c0_9, %c0_10] : memref<36x36xf32, #tpu.memory_space<vmem>>, vector<36x36xf32>
    tpu.vector_store %arg3[%c0_9, %c0_10], %12 {strides = array<i32>} : memref<36x36xf32, #tpu.memory_space<vmem>>, vector<36x36xf32>,
    return
  }
  func.func @transform_0(%arg0: i32) -> (i32, i32) {
    %c0_i32 = arith.constant 0 : i32
    %c0_i32_0 = arith.constant 0 : i32
    return %arg0, %c0_i32 : i32, i32
  }
  func.func @transform_1(%arg0: i32) -> (i32, i32) {
    %c0_i32 = arith.constant 0 : i32
    %c0_i32_0 = arith.constant 0 : i32
    %c0_i32_1 = arith.constant 0 : i32
    return %c0_i32, %c0_i32_0 : i32, i32
  }
  func.func @transform_2(%arg0: i32) -> (i32, i32) {
    %c0_i32 = arith.constant 0 : i32
    %c0_i32_0 = arith.constant 0 : i32
    %c0_i32_1 = arith.constant 0 : i32
    return %c0_i32, %c0_i32_0 : i32, i32
  }
}

</mosaic_0001>

<bundles_post_ra>
// kernel: tpu_custom_call.1
= control target key start
LH: loop header
LB: loop body
LE: loop exit
PB: predicated region body
PF: predicated region fallthrough
CT: control target
= control target key end

     0   :  { %8 = vsyncpa [#allocation3], 0  ;;  %s744_s0 = inlined_call_operand.vmem [shape: bf16[512,36], index: 0, kind: input, shape index: {}]   ;;  %s745_s1 = inlined_call_operand.hbm [shape: f32[1,36], index: 1, kind: output, shape index: {0}]   ;;  %s746_s2 = inlined_call_operand.hbm [shape: f32[36,36], index: 2, kind: output, shape index: {1}]  }
   0x1   :  { %9 = vsyncpa [#allocation5], 0  ;;  %s630_s9 = smov 0  }
   0x2 LB: > { %s636_s10 = sadd.s32 4294967295, %s606_s9   ;;  %p428_p0 = scmp.ge.s32.totalorder %s606_s9, 1  ;;  %s606_s9 = sphi %s630_s9, %s15_s9  }
   0x3   : > { %p108_p1 = scmp.lt.s32.totalorder %s606_s9, 5 }
   0x5   : > { %p109_p2 = pnand %p428_p0, %p108_p1 }
   0x6   : > { %s429_s11 = sshll.u32 (!%p109_p2), %s636_s10, 4  ;;  %p431_p4 = scmp.ne.s32.totalorder (!%p109_p2), %s636_s10, 0 }
   0x7   : > { %112 = sbr.rel (%p109_p2) target bundleno = 340 (0x154), region = 24  ;;  %p126_p3 = scmp.lt.s32.totalorder (!%p109_p2), %s429_s11, 63 }
   0xc   : > { %s748_s11 = smov (!%p126_p3, %s429_s11), 63  ;;  %135 = sbr.rel (%p431_p4) target bundleno = 22 (0x16), region = 28 }
   0xd   : > { %s430_s12 = sshll.u32 %s748_s11, 2 }
   0xe   : > { %s644_s15 = scalar_lea.vmem %s744_s0, %s430_s12 }
  0x11   : > { %vm136_vm0 = vcmask 286720   ;;  %vm138_vm1 = vcmask 293888   ;;  %vm143_vm2 = vcmask 289792   ;;  %v608_v0 = vmov 0.0  }
  0x12   : > { %137 = vst.msk [vmem:[#allocation2] sm:$0x1] %vm136_vm0, %v608_v0 }
  0x13   : > { %139 = vst.msk [vmem:[#allocation4] sm:$0xff] %vm138_vm1, %v608_v0  ;;  %140 = vst.msk [vmem:[#allocation4 + $0x8] sm:$0xff] %vm138_vm1, %v608_v0 }
  0x14   : > { %141 = vst.msk [vmem:[#allocation4 + $0x10] sm:$0xff] %vm138_vm1, %v608_v0  ;;  %142 = vst.msk [vmem:[#allocation4 + $0x18] sm:$0xff] %vm138_vm1, %v608_v0 }
  0x15   : > { %144 = vst.msk [vmem:[#allocation4 + $0x20] sm:$0xf] %vm143_vm2, %v608_v0 }
  0x16 PF: > { %v648_v1 = vld [vmem:[%s644_s15] sm:$0xff]   ;;  %vm178_vm3 = vcmask 293888   ;;  %v651_v2 = vld [vmem:[%s644_s15 + $0x8] sm:$0xff]   ;;  %v609_v6 = vmov 0.0   ;;  %v660_v8 = vld [vmem:[%s644_s15 + $0x10] sm:$0xff]   ;;  %vm610_vm4 = vmmov 0  }
  0x17   : > { %v162_v3 = vunpack.c.l.bf16 %v648_v1  ;;  %v163_v4 = vunpack.c.h.bf16 %v648_v1  ;;  %v164_v5 = vunpack.c.l.bf16 %v651_v2  ;;  %457 = vmatprep.subr.bf16.mxu0 %v609_v6  ;;  %485 = vmatprep.subr.bf16.mxu1 %v609_v6  ;;  %v165_v7 = vunpack.c.h.bf16 %v651_v2  ;;  %v151_v17 = vld [vmem:[%s644_s15 + $0x18] sm:$0xff]   ;;  %v153_v25 = vld [vmem:[%s644_s15 + $0x20] sm:$0xff]   ;;  %v157_v28 = vld [vmem:[%s644_s15 + $0x30] sm:$0xff]   ;;  %p509_p5 = scmp.eq.s32.totalorder %s636_s10, 3  ;;  %s611_s16 = smov [#allocation2]  }
  0x18   : > { %473 = vmatprep.mubr.msk.bf16.mxu0 %vm610_vm4, %v609_v6  ;;  %477 = vmatprep.mubr.msk.bf16.mxu1 %vm610_vm4, %v609_v6  ;;  %v166_v12 = vunpack.c.l.bf16 %v660_v8  ;;  %v167_v15 = vunpack.c.h.bf16 %v660_v8  ;;  %v168_v19 = vunpack.c.l.bf16 %v151_v17  ;;  %v159_v20 = vld [vmem:[%s644_s15 + $0x38] sm:$0xff]   ;;  %v169_v23 = vunpack.c.h.bf16 %v151_v17  ;;  %v155_v33 = vld [vmem:[%s644_s15 + $0x28] sm:$0xff]   ;;  %s362_s17 = sshll.u32 %s611_s16, 4  ;;  %s363_s17 = int_to_ptr.vmem [resolvable:$true] %s362_s17 }
  0x19   : > { %v179_v9 = vsel %vm178_vm3, %v162_v3, 0.0  ;;  %v180_v10 = vsel %vm178_vm3, %v163_v4, 0.0  ;;  %272 = vxpose.xlu0.c.b16.start [1/8] (narrow) %v648_v1, 48  ;;  %v182_v11 = vsel %vm178_vm3, %v164_v5, 0.0  ;;  %v184_v14 = vsel %vm178_vm3, %v165_v7, 0.0  ;;  %458 = vmatpush3.bf16.msra.mxu0 %v159_v20  ;;  %s544_s18 = scalar_lea.vmem %s363_s17, 16  ;;  %p551_p9 = scmp.lt.s32.totalorder %s363_s17, %s363_s17 }
  0x1a   : > { %v181_v13 = vadd.f32 %v180_v10, %v179_v9  ;;  %v186_v18 = vsel %vm178_vm3, %v166_v12, 0.0  ;;  %v188_v22 = vsel %vm178_vm3, %v167_v15, 0.0  ;;  %v190_v26 = vsel %vm178_vm3, %v168_v19, 0.0  ;;  %493 = vmatpush3.bf16.msra.mxu1 %v159_v20  ;;  %459 = vmatprep.subr.bf16.mxu0 %v609_v6  ;;  %v161_v3 = vld [vmem:[#allocation2] sm:$0x1]  ;;  %p545_p6 = scmp.ne.s32.totalorder %s363_s17, %s544_s18  ;;  %s550_s19 = scalar_lea.vmem %s363_s17, 32 }
  0x1b   : > { %v170_v27 = vunpack.c.l.bf16 %v153_v25  ;;  %v192_v30 = vsel %vm178_vm3, %v169_v23, 0.0  ;;  %v171_v31 = vunpack.c.h.bf16 %v153_v25  ;;  %486 = vmatprep.subr.bf16.mxu1 %v609_v6  ;;  %v172_v35 = vunpack.c.l.bf16 %v155_v33  ;;  %p552_p10 = scmp.lt.s32.totalorder %s550_s19, %s544_s18 }
  0x1c   : > { %v183_v16 = vadd.f32 %v182_v11, %v181_v13  ;;  %v173_v38 = vunpack.c.h.bf16 %v155_v33  ;;  %v174_v41 = vunpack.c.l.bf16 %v157_v28  ;;  %v175_v44 = vunpack.c.h.bf16 %v157_v28  ;;  %p546_p7 = pnand %p545_p6, %p509_p5 }
  0x1d   : > { %273 = vxpose.xlu0.c.b16.cont [2/8] (narrow) %v651_v2, 48  ;;  %v194_v34 = vsel %vm178_vm3, %v170_v27, 0.0  ;;  %460 = vmatpush3.bf16.msra.mxu0 %v157_v28  ;;  %v196_v37 = vsel %vm178_vm3, %v171_v31, 0.0  ;;  %v198_v40 = vsel %vm178_vm3, %v172_v35, 0.0  ;;  %v176_v47 = vunpack.c.l.bf16 %v159_v20  ;;  %p553_p11 = por %p552_p10, %p551_p9 }
  0x1e   : > { %v185_v21 = vadd.f32 %v184_v14, %v183_v16  ;;  %494 = vmatpush3.bf16.msra.mxu1 %v157_v28  ;;  %461 = vmatprep.subr.bf16.mxu0 %v609_v6  ;;  %v200_v43 = vsel %vm178_vm3, %v173_v38, 0.0  ;;  %v202_v46 = vsel %vm178_vm3, %v174_v41, 0.0  ;;  %v204_v49 = vsel %vm178_vm3, %v175_v44, 0.0  ;;  %p547_p8 = pneg %p546_p7 }
  0x1f   : > { %487 = vmatprep.subr.bf16.mxu1 %v609_v6  ;;  %v177_v50 = vunpack.c.h.bf16 %v159_v20  ;;  %v206_v52 = vsel %vm178_vm3, %v176_v47, 0.0  ;;  %vm217_vm5 = vcmask 286720  }
  0x20   : > { %v187_v24 = vadd.f32 %v186_v18, %v185_v21  ;;  %p554_p12 = pnand %p553_p11, %p547_p8 }
  0x21   : > { %274 = vxpose.xlu0.c.b16.cont [3/8] (narrow) %v660_v8, 48  ;;  %462 = vmatpush3.bf16.msra.mxu0 %v155_v33  ;;  %v208_v54 = vsel %vm178_vm3, %v177_v50, 0.0 }
  0x22   : > { %v189_v29 = vadd.f32 %v188_v22, %v187_v24  ;;  %495 = vmatpush3.bf16.msra.mxu1 %v155_v33  ;;  %463 = vmatprep.subr.bf16.mxu0 %v609_v6 }
  0x23   : > { %488 = vmatprep.subr.bf16.mxu1 %v609_v6 }
  0x24   : > { %v191_v32 = vadd.f32 %v190_v26, %v189_v29 }
  0x25   : > { %275 = vxpose.xlu0.c.b16.cont [4/8] (narrow) %v151_v17, 48  ;;  %464 = vmatpush3.bf16.msra.mxu0 %v153_v25 }
  0x26   : > { %v193_v36 = vadd.f32 %v192_v30, %v191_v32  ;;  %496 = vmatpush3.bf16.msra.mxu1 %v153_v25  ;;  %465 = vmatprep.subr.bf16.mxu0 %v609_v6 }
  0x27   : > { %489 = vmatprep.subr.bf16.mxu1 %v609_v6 }
  0x28   : > { %v195_v39 = vadd.f32 %v194_v34, %v193_v36 }
  0x29   : > { %276 = vxpose.xlu0.c.b16.cont [5/8] (narrow) %v153_v25, 48  ;;  %466 = vmatpush3.bf16.msra.mxu0 %v151_v17 }
  0x2a   : > { %v197_v42 = vadd.f32 %v196_v37, %v195_v39  ;;  %497 = vmatpush3.bf16.msra.mxu1 %v151_v17  ;;  %467 = vmatprep.subr.bf16.mxu0 %v609_v6 }
  0x2b   : > { %490 = vmatprep.subr.bf16.mxu1 %v609_v6 }
  0x2c   : > { %v199_v45 = vadd.f32 %v198_v40, %v197_v42 }
  0x2d   : > { %277 = vxpose.xlu0.c.b16.cont [6/8] (narrow) %v155_v33, 48  ;;  %468 = vmatpush3.bf16.msra.mxu0 %v660_v8 }
  0x2e   : > { %v201_v48 = vadd.f32 %v200_v43, %v199_v45  ;;  %498 = vmatpush3.bf16.msra.mxu1 %v660_v8  ;;  %469 = vmatprep.subr.bf16.mxu0 %v609_v6 }
  0x2f   : > { %491 = vmatprep.subr.bf16.mxu1 %v609_v6 }
  0x30   : > { %v203_v51 = vadd.f32 %v202_v46, %v201_v48 }
  0x31   : > { %278 = vxpose.xlu0.c.b16.cont [7/8] (narrow) %v157_v28, 48  ;;  %470 = vmatpush3.bf16.msra.mxu0 %v651_v2 }
  0x32   : > { %v205_v53 = vadd.f32 %v204_v49, %v203_v51  ;;  %499 = vmatpush3.bf16.msra.mxu1 %v651_v2  ;;  %471 = vmatprep.subr.bf16.mxu0 %v609_v6 }
  0x33   : > { %492 = vmatprep.subr.bf16.mxu1 %v609_v6 }
  0x34   : > { %v207_v55 = vadd.f32 %v206_v52, %v205_v53 }
  0x35   : > { %279 = vxpose.xlu0.c.b16.end [8/8] (narrow) %v159_v20, 48  ;;  %472 = vmatpush3.bf16.msra.mxu0 %v648_v1 }
  0x36   : > { %v209_v56 = vadd.f32 %v208_v54, %v207_v55  ;;  %500 = vmatpush3.bf16.msra.mxu1 %v648_v1 }
  0x38   : > { %v210_v60 = vrot.slane %v209_v56, 4 }
  0x3a   : > { %v211_v61 = vadd.f32 %v210_v60, %v209_v56 }
  0x3c   : > { %v212_v62 = vrot.slane %v211_v61, 2 }
  0x3e   : > { %v213_v63 = vadd.f32 %v212_v62, %v211_v61 }
  0x40   : > { %v214_v0 = vrot.slane %v213_v63, 1 }
  0x42   : > { %v215_v2 = vadd.f32 %v214_v0, %v213_v63 }
  0x44   : > { %v216_v4 = vadd.f32 %v215_v2, %v161_v3 }
  0x46   : > { %218 = vst.msk [vmem:[#allocation2] sm:$0x1] %vm217_vm5, %v216_v4 }
  0x7b   : > { %v280_v57 = vpop.trf.xlu0 }
  0x7c   : > { %474 = vmatmul.mubr.bf16.vlgmr.msra.gmra.mxu0 %v280_v57 }
  0x7f   : > { %v281_v58 = vpop.trf.xlu0 }
  0x80   : > { %478 = vmatmul.mubr.bf16.vlgmr.msra.gmra.mxu1 %v281_v58 }
  0x81   : > { %481 = vmatprep.mubr.msk.bf16.mxu1 %vm610_vm4, %v609_v6 }
  0x83   : > { %v282_v59 = vpop.trf.xlu0 }
  0x88   : > { %482 = vmatmul.mubr.bf16.gmra.mxu1 %v282_v59 }
  0x89   : > { %557 = shalt.err (!%p554_p12)
}
  0x8a   : > { %502 = dma.vmem_to_hbm [thread:$0]  (%p509_p5), %s363_s17, 16, %s745_s1, [#allocation3]   ;;  %v219_v1 = vld [vmem:[#allocation4] sm:$0xff]  ;;  %v220_v8 = vld [vmem:[#allocation4 + $0x8] sm:$0xff]  ;;  %v221_v9 = vld [vmem:[#allocation4 + $0x10] sm:$0xff]  ;;  %vm353_vm6 = vcmask 289792  }
  0x8b   : > { %v222_v16 = vld [vmem:[#allocation4 + $0x18] sm:$0xff]  ;;  %s612_s22 = smov [#allocation4]   ;;  %v223_v20 = vld [vmem:[#allocation4 + $0x20] sm:$0xf] }
  0x8c   : > { %s372_s23 = sshll.u32 %s612_s22, 4  ;;  %s373_s23 = int_to_ptr.vmem [resolvable:$true] %s372_s23 }
  0x8d   : > { %s568_s24 = scalar_lea.vmem %s373_s23, 640  ;;  %p575_p2 = scmp.lt.s32.totalorder %s373_s23, %s373_s23 }
  0x8e   : > { %p569_p13 = scmp.ne.s32.totalorder %s373_s23, %s568_s24  ;;  %p576_p3 = scmp.lt.s32.totalorder %s568_s24, %s568_s24 }
  0x90   : > { %p570_p0 = pnand %p569_p13, %p509_p5  ;;  %p577_p4 = por %p576_p3, %p575_p2 }
  0x92   : > { %p571_p1 = pneg %p570_p0 }
  0x94   : > { %p578_p6 = pnand %p577_p4, %p571_p1 }
 0x13c   : > { %v322_v5 = vpop.f32.mrf.mxu0 }
 0x13d   : > { %v344_v6 = vadd.f32 %v322_v5, %v219_v1 }
 0x13e   : > { %v475_v7 = vpop.f32.mrf.mxu0 }
 0x13f   : > { %349 = vst.msk [vmem:[#allocation4] sm:$0xff] %vm178_vm3, %v344_v6 }
 0x140   : > { %v325_v10 = vpop.f32.mrf.mxu0  ;;  %v330_v11 = vpop.f32.mrf.mxu1 }
 0x141   : > { %v345_v12 = vadd.f32 %v325_v10, %v220_v8  ;;  %v346_v13 = vadd.f32 %v330_v11, %v221_v9 }
 0x142   : > { %v476_v14 = vpop.f32.mrf.mxu0  ;;  %v479_v15 = vpop.f32.mrf.mxu1 }
 0x143   : > { %350 = vst.msk [vmem:[#allocation4 + $0x8] sm:$0xff] %vm178_vm3, %v345_v12  ;;  %351 = vst.msk [vmem:[#allocation4 + $0x10] sm:$0xff] %vm178_vm3, %v346_v13 }
 0x144   : > { %v333_v17 = vpop.f32.mrf.mxu1 }
 0x145   : > { %v347_v18 = vadd.f32 %v333_v17, %v222_v16 }
 0x146   : > { %v480_v19 = vpop.f32.mrf.mxu1 }
 0x147   : > { %352 = vst.msk [vmem:[#allocation4 + $0x18] sm:$0xff] %vm178_vm3, %v347_v18 }
 0x148   : > { %v338_v21 = vpop.f32.mrf.mxu1 }
 0x149   : > { %v348_v22 = vadd.f32 %v338_v21, %v223_v20 }
 0x14a   : > { %v483_v23 = vpop.f32.mrf.mxu1 }
 0x14b   : > { %354 = vst.msk [vmem:[#allocation4 + $0x20] sm:$0xf] %vm353_vm6, %v348_v22 }
 0x14c   : > { %v341_v24 = vpop.f32.mrf.mxu1 }
 0x14d   : > { %581 = shalt.err (!%p578_p6)
}
 0x14e   : > { %s613_s25 = smov 128   ;;  %s614_s26 = smov 8   ;;  %v484_v25 = vpop.f32.mrf.mxu1 }
 0x14f   : > { %504 = dma.vmem_to_hbm [thread:$0]  (%p509_p5), %s373_s23, 640, %s746_s2, [#allocation5], %s613_s25, %s613_s25, %s614_s26  }
 0x150   : > { %597 = dma.done.wait (%p509_p5), [#allocation3], 16  }
 0x151   : > { %599 = vsyncadd (%p509_p5), [#allocation3], 4294967280 }
 0x152   : > { %601 = dma.done.wait (%p509_p5), [#allocation5], 640  }
 0x153   : > { %603 = vsyncadd (%p509_p5), [#allocation5], 4294966656 }
 0x154 PF: > { %s15_s9 = sadd.s32 1, %s606_s9  }
 0x155   : > { %p12_p7 = scmp.ge.s32.totalorder %s15_s9, 6  }
 0x157   :  { %14 = sbr.rel (!%p12_p7) target bundleno = 2 (0x2), region = 63 }
 0x15c   :  { %392 = vsyncpa [#allocation3], 1 }
 0x15d   :  { %394 = vsyncpa [#allocation3 + $0x1], 1 }
 0x15e   :  { %395 = vsyncpa [#allocation5], 1 }

</bundles_post_ra>
